<compile_context>
chip_gen: v6e
topology: v6e:2x2x1
jax: 0.10.0
libtpu: 0.0.40
codegen_flags: <defaults>
</compile_context>

<pallas_src>
import functools

import jax
import jax.numpy as jnp
from jax import lax
from jax.experimental import pallas as pl
from jax.experimental.pallas import tpu as pltpu

BN_EPS = 0.8          # nn.BatchNorm1d(out_features, 0.8) -> eps = 0.8
LEAKY_SLOPE = 0.2     # nn.LeakyReLU(0.2)

_MXU_DTYPE = jnp.bfloat16
_VMEM_BUDGET_BYTES = 48 * 1024 * 1024   # v7x-safe (64 MiB physical per TC)


def _round_up(x, m):
    return (x + m - 1) // m * m


def _vmem_bytes(b_pad, fin_pad, tn, tk, x_resident):
    """Rough double-buffered VMEM footprint of one grid step."""
    bf = jnp.dtype(_MXU_DTYPE).itemsize
    x_b = b_pad * (fin_pad if x_resident else tk) * bf
    w_b = tk * tn * bf
    p_b = 8 * tn * 4
    o_b = b_pad * tn * 4
    return 2 * (x_b + w_b + p_b + o_b)


def _gblock_kernel(x_ref, w_ref, p_ref, o_ref, *, tk, x_resident, normalize, inv_b):
    """Computes one (B_pad, tn) output tile, accumulated over the Fin (k) axis.

    x_ref: (B_pad, fin_pad) bf16 if x_resident, else (B_pad, tk) bf16
    w_ref: (tk, tn) bf16   -- weight pre-transposed to (Fin, Fout): MXU RHS is (K, N)
    p_ref: (8, tn) f32     -- row 0 = gamma (or bias), row 1 = beta
    o_ref: (B_pad, tn) f32 -- doubles as the accumulator (block index invariant in k)
    """
    k = pl.program_id(1)

    @pl.when(k == 0)
    def _():
        o_ref[...] = jnp.zeros_like(o_ref)

    if x_resident:
        start = pl.multiple_of(k * tk, tk)
        xk = x_ref[:, pl.ds(start, tk)]
    else:
        xk = x_ref[...]

    o_ref[...] += lax.dot_general(
        xk, w_ref[...],
        dimension_numbers=(((1,), (0,)), ((), ())),
        preferred_element_type=jnp.float32)

    @pl.when(k == pl.num_programs(1) - 1)
    def _():
        z = o_ref[...]                                        # (B_pad, tn) f32
        if normalize:
            # Train-mode (biased) batch statistics.  Padded batch rows are exactly
            # zero *because* the linear bias is dropped here (it cancels against
            # the batch-mean subtraction) -- do NOT re-add the bias in this path.
            s = jnp.sum(z, axis=0, keepdims=True)             # (1, tn)
            sq = jnp.sum(z * z, axis=0, keepdims=True)        # (1, tn)
            mean = s * inv_b
            var = jnp.maximum(sq * inv_b - mean * mean, 0.0)  # guard cancellation
            gamma = p_ref[0:1, :]
            beta = p_ref[1:2, :]
            scale = gamma * lax.rsqrt(var + BN_EPS)           # EUP rsqrt (free slot)
            shift = beta - mean * scale
            z = z * scale + shift                             # single FMA epilogue
        else:
            z = z + p_ref[0:1, :]                             # linear bias
        o_ref[...] = jnp.where(z > 0, z, LEAKY_SLOPE * z).astype(o_ref.dtype)


def gblock_prepare(weight, bias, gamma, beta, *, should_normalize, fin_pad, fout_pad):
    """Pad / cast / transpose the per-layer constants (hoistable off the hot path)."""
    Fout, Fin = weight.shape
    w_p = jnp.zeros((fin_pad, fout_pad), _MXU_DTYPE)
    w_p = w_p.at[:Fin, :Fout].set(weight.T.astype(_MXU_DTYPE))
    params = jnp.zeros((8, fout_pad), jnp.float32)
    if should_normalize:
        params = params.at[0, :Fout].set(gamma.astype(jnp.float32))
        params = params.at[1, :Fout].set(beta.astype(jnp.float32))
    else:
        params = params.at[0, :Fout].set(bias.astype(jnp.float32))
    return w_p, params


def gblock_forward(x, weight, bias, gamma, beta, *, should_normalize=True,
                   tn=256, tk=256, vmem_budget_bytes=_VMEM_BUDGET_BYTES):
    """x: (B, Fin); weight: (Fout, Fin) as in nn.Linear; bias/gamma/beta: (Fout,)."""
    B, Fin = x.shape
    Fout, Fin_w = weight.shape
    assert Fin_w == Fin

    tn = max(128, tn)
    tk = max(128, tk)

    b_pad = _round_up(B, 16)            # bf16 sublane packing
    fin_pad = _round_up(Fin, tk)        # lane-aligned contraction tiles
    fout_pad = _round_up(Fout, tn)      # lane-dense output tiles

    # Shrink tiles (power-of-two halving, down to 128) until the streamed-x
    # footprint fits the v7x-safe VMEM budget.  fin_pad/fout_pad stay multiples
    # of tk/tn because we only halve.
    while (_vmem_bytes(b_pad, fin_pad, tn, tk, False) > vmem_budget_bytes
           and (tn > 128 or tk > 128)):
        if tk >= tn and tk > 128:
            tk //= 2
        else:
            tn //= 2

    # Keep the whole padded x resident in VMEM when it fits; otherwise the
    # (0, k) index_map would re-stream x once per output tile.
    x_resident = _vmem_bytes(b_pad, fin_pad, tn, tk, True) <= vmem_budget_bytes

    # TODO(synk): cache (w_p, params) across calls so the weight pad/cast is not
    # an extra HBM round-trip every forward.
    w_p, params = gblock_prepare(weight, bias, gamma, beta,
                                 should_normalize=should_normalize,
                                 fin_pad=fin_pad, fout_pad=fout_pad)

    x_p = jnp.zeros((b_pad, fin_pad), _MXU_DTYPE)
    x_p = x_p.at[:B, :Fin].set(x.astype(_MXU_DTYPE))

    # inv_b is baked in (recompile per distinct B); B also changes padded shapes
    # so this only matters within a 16-row padding bucket.
    kernel = functools.partial(_gblock_kernel, tk=tk, x_resident=x_resident,
                               normalize=should_normalize, inv_b=1.0 / B)

    if x_resident:
        x_spec = pl.BlockSpec((b_pad, fin_pad), lambda j, k: (0, 0))
    else:
        x_spec = pl.BlockSpec((b_pad, tk), lambda j, k: (0, k))

    grid = (fout_pad // tn, fin_pad // tk)   # Fout parallel (megacore), Fin last
    est = _vmem_bytes(b_pad, fin_pad, tn, tk, x_resident)
    vmem_limit = int(min(max(est + 4 * 1024 * 1024, 32 * 1024 * 1024),
                         64 * 1024 * 1024))

    out = pl.pallas_call(
        kernel,
        out_shape=jax.ShapeDtypeStruct((b_pad, fout_pad), jnp.float32),
        grid_spec=pltpu.PrefetchScalarGridSpec(
            num_scalar_prefetch=0,
            grid=grid,
            in_specs=[
                x_spec,                                         # x (resident or streamed)
                pl.BlockSpec((tk, tn), lambda j, k: (k, j)),    # weight tile (K, N)
                pl.BlockSpec((8, tn), lambda j, k: (0, j)),     # packed params slab
            ],
            out_specs=pl.BlockSpec((b_pad, tn), lambda j, k: (0, j)),
        ),
        compiler_params=pltpu.CompilerParams(
            dimension_semantics=("parallel", "arbitrary"),
            vmem_limit_bytes=vmem_limit,
        ),
    )(x_p, w_p, params)

    return out[:B, :Fout]


def gblock_reference(x, weight, bias, gamma, beta, *, should_normalize=True):
    """Pure-JAX reference matching PyTorch training-mode forward."""
    z = jnp.dot(x, weight.T, precision=lax.Precision.HIGHEST) + bias
    if should_normalize:
        mean = jnp.mean(z, axis=0, keepdims=True)
        var = jnp.mean((z - mean) ** 2, axis=0, keepdims=True)
        z = (z - mean) / jnp.sqrt(var + BN_EPS) * gamma + beta
    return jnp.where(z > 0, z, LEAKY_SLOPE * z)


def _run_case(key, B, Fin, Fout, should_normalize):
    kx, kw, kb, kg, kbt = jax.random.split(key, 5)
    x = jax.random.normal(kx, (B, Fin), dtype=jnp.float32)
    bound = 1.0 / (Fin ** 0.5)
    weight = jax.random.uniform(kw, (Fout, Fin), jnp.float32, -bound, bound)
    bias = jax.random.uniform(kb, (Fout,), jnp.float32, -bound, bound)
    gamma = 1.0 + 0.1 * jax.random.normal(kg, (Fout,), jnp.float32)
    beta = 0.1 * jax.random.normal(kbt, (Fout,), jnp.float32)

    out = gblock_forward(x, weight, bias, gamma, beta,
                         should_normalize=should_normalize)
    out = jax.block_until_ready(out)
    assert out.shape == (B, Fout)

    # Reference on bf16-rounded operands (the kernel feeds the MXU bf16 with f32
    # accumulation), f32 everywhere else.
    xq = x.astype(jnp.bfloat16).astype(jnp.float32)
    wq = weight.astype(jnp.bfloat16).astype(jnp.float32)
    ref = gblock_reference(xq, wq, bias, gamma, beta,
                           should_normalize=should_normalize)
    assert jnp.allclose(out, ref, atol=2e-3, rtol=2e-3), (
        f"mismatch B={B} Fin={Fin} Fout={Fout} norm={should_normalize}: "
        f"max_err={float(jnp.max(jnp.abs(out - ref)))}")


if __name__ == "__main__":
    key = jax.random.PRNGKey(0)
    k1, k2, k3 = jax.random.split(key, 3)

    # Small primary case (single tile, padding on every axis), both paths.
    _run_case(k1, B=8, Fin=64, Fout=128, should_normalize=True)
    _run_case(k2, B=8, Fin=64, Fout=128, should_normalize=False)

    # Multi-tile case: (2, 2) grid with 256-tiles, resident-x slicing, ragged
    # Fin/Fout padding, BN over a padded batch.
    _run_case(k3, B=16, Fin=384, Fout=320, should_normalize=True)

    print("KERNEL_OK")
</pallas_src>

<mosaic_0001>
module attributes {stable_mosaic.version = 11 : i64} {
  func.func @_gblock_kernel(%arg0: i32, %arg1: i32, %arg2: memref<16x256xbf16, #tpu.memory_space<vmem>>, %arg3: memref<256x256xbf16, #tpu.memory_space<vmem>>, %arg4: memref<8x256xf32, #tpu.memory_space<vmem>>, %arg5: memref<16x256xf32, #tpu.memory_space<vmem>>) attributes {dimension_semantics = [#tpu.dimension_semantics<parallel>, #tpu.dimension_semantics<arbitrary>], iteration_bounds = array<i64: 1, 1>, scalar_prefetch = 0 : i64, scratch_operands = 0 : i64, tpu.core_type = #tpu.core_type<tc>, window_params = [{pipeline_mode = #tpu.pipeline_mode<synchronous>, transform_indices = @transform_0, window_bounds = array<i64: 16, 256>}, {transform_indices = @transform_1, window_bounds = array<i64: 256, 256>}, {transform_indices = @transform_2, window_bounds = array<i64: 8, 256>}, {transform_indices = @transform_3, window_bounds = array<i64: 16, 256>}]} {
    %c0_i32 = arith.constant 0 : i32
    %0 = arith.cmpi eq, %arg1, %c0_i32 : i32
    %1 = arith.extui %0 : i1 to i32
    %c0_i32_0 = arith.constant 0 : i32
    %2 = arith.cmpi ne, %1, %c0_i32_0 : i32
    scf.if %2 {
      %cst_9 = arith.constant 0.000000e+00 : f32
      %15 = vector.broadcast %cst_9 : f32 to vector<16x256xf32>
      %c0_10 = arith.constant 0 : index
      %c0_11 = arith.constant 0 : index
      %16 = vector.load %arg5[%c0_10, %c0_11] : memref<16x256xf32, #tpu.memory_space<vmem>>, vector<16x256xf32>
      tpu.vector_store %arg5[%c0_10, %c0_11], %15 {strides = array<i32>} : memref<16x256xf32, #tpu.memory_space<vmem>>, vector<16x256xf32>,
    } else {
    }
    %c256_i32 = arith.constant 256 : i32
    %3 = arith.muli %arg1, %c256_i32 : i32
    %4 = tpu.assume_multiple %3, 256 : i32
    %c0 = arith.constant 0 : index
    %5 = arith.index_cast %4 : i32 to index
    %6 = vector.load %arg2[%c0, %5] : memref<16x256xbf16, #tpu.memory_space<vmem>>, vector<16x256xbf16>
    %c0_1 = arith.constant 0 : index
    %c0_2 = arith.constant 0 : index
    %7 = vector.load %arg5[%c0_1, %c0_2] : memref<16x256xf32, #tpu.memory_space<vmem>>, vector<16x256xf32>
    %c0_3 = arith.constant 0 : index
    %c0_4 = arith.constant 0 : index
    %8 = vector.load %arg3[%c0_3, %c0_4] : memref<256x256xbf16, #tpu.memory_space<vmem>>, vector<256x256xbf16>
    %cst = arith.constant dense<0.000000e+00> : vector<16x256xf32>
    %9 = tpu.matmul %6, %8, %cst {dimension_numbers = #tpu.dot_dimension_numbers<[1], [0], [0], [1], [0, 0, 1, 1], [], []>} : vector<16x256xbf16>, vector<256x256xbf16>, vector<16x256xf32> -> vector<16x256xf32>
    %10 = arith.addf %7, %9 : vector<16x256xf32>
    %c0_5 = arith.constant 0 : index
    %c0_6 = arith.constant 0 : index
    %11 = vector.load %arg5[%c0_5, %c0_6] : memref<16x256xf32, #tpu.memory_space<vmem>>, vector<16x256xf32>
    tpu.vector_store %arg5[%c0_5, %c0_6], %10 {strides = array<i32>} : memref<16x256xf32, #tpu.memory_space<vmem>>, vector<16x256xf32>,
    %c0_i32_7 = arith.constant 0 : i32
    %12 = arith.cmpi eq, %arg1, %c0_i32_7 : i32
    %13 = arith.extui %12 : i1 to i32
    %c0_i32_8 = arith.constant 0 : i32
    %14 = arith.cmpi ne, %13, %c0_i32_8 : i32
    scf.if %14 {
      %c0_9 = arith.constant 0 : index
      %c0_10 = arith.constant 0 : index
      %15 = vector.load %arg5[%c0_9, %c0_10] : memref<16x256xf32, #tpu.memory_space<vmem>>, vector<16x256xf32>
      %cst_11 = arith.constant dense<0.000000e+00> : vector<256xf32>
      %16 = vector.multi_reduction <add>, %15, %cst_11 [0] : vector<16x256xf32> to vector<256xf32>
      %17 = vector.shape_cast %16 : vector<256xf32> to vector<1x256xf32>
      %18 = arith.mulf %15, %15 : vector<16x256xf32>
      %cst_12 = arith.constant dense<0.000000e+00> : vector<256xf32>
      %19 = vector.multi_reduction <add>, %18, %cst_12 [0] : vector<16x256xf32> to vector<256xf32>
      %20 = vector.shape_cast %19 : vector<256xf32> to vector<1x256xf32>
      %cst_13 = arith.constant 1.250000e-01 : f32
      %21 = vector.broadcast %cst_13 : f32 to vector<1x256xf32>
      %22 = arith.mulf %17, %21 : vector<1x256xf32>
      %cst_14 = arith.constant 1.250000e-01 : f32
      %23 = vector.broadcast %cst_14 : f32 to vector<1x256xf32>
      %24 = arith.mulf %20, %23 : vector<1x256xf32>
      %25 = arith.mulf %22, %22 : vector<1x256xf32>
      %26 = arith.subf %24, %25 : vector<1x256xf32>
      %cst_15 = arith.constant 0.000000e+00 : f32
      %27 = vector.broadcast %cst_15 : f32 to vector<1x256xf32>
      %28 = arith.maximumf %26, %27 : vector<1x256xf32>
      %c0_16 = arith.constant 0 : index
      %c0_17 = arith.constant 0 : index
      %29 = vector.load %arg4[%c0_16, %c0_17] : memref<8x256xf32, #tpu.memory_space<vmem>>, vector<1x256xf32>
      %c1 = arith.constant 1 : index
      %c0_18 = arith.constant 0 : index
      %30 = vector.load %arg4[%c1, %c0_18] : memref<8x256xf32, #tpu.memory_space<vmem>>, vector<1x256xf32>
      %cst_19 = arith.constant 8.000000e-01 : f32
      %31 = vector.broadcast %cst_19 : f32 to vector<1x256xf32>
      %32 = arith.addf %28, %31 : vector<1x256xf32>
      %33 = math.rsqrt %32 : vector<1x256xf32>
      %34 = arith.mulf %29, %33 : vector<1x256xf32>
      %35 = arith.mulf %22, %34 : vector<1x256xf32>
      %36 = arith.subf %30, %35 : vector<1x256xf32>
      %37 = vector.broadcast %34 : vector<1x256xf32> to vector<16x256xf32>
      %38 = arith.mulf %15, %37 : vector<16x256xf32>
      %39 = vector.broadcast %36 : vector<1x256xf32> to vector<16x256xf32>
      %40 = arith.addf %38, %39 : vector<16x256xf32>
      %cst_20 = arith.constant 0.000000e+00 : f32
      %41 = vector.broadcast %cst_20 : f32 to vector<16x256xf32>
      %42 = arith.cmpf ogt, %40, %41 : vector<16x256xf32>
      %cst_21 = arith.constant 2.000000e-01 : f32
      %43 = vector.broadcast %cst_21 : f32 to vector<16x256xf32>
      %44 = arith.mulf %43, %40 : vector<16x256xf32>
      %45 = arith.select %42, %40, %44 : vector<16x256xi1>, vector<16x256xf32>
      %c0_22 = arith.constant 0 : index
      %c0_23 = arith.constant 0 : index
      %46 = vector.load %arg5[%c0_22, %c0_23] : memref<16x256xf32, #tpu.memory_space<vmem>>, vector<16x256xf32>
      tpu.vector_store %arg5[%c0_22, %c0_23], %45 {strides = array<i32>} : memref<16x256xf32, #tpu.memory_space<vmem>>, vector<16x256xf32>,
    } else {
    }
    return
  }
  func.func @transform_0(%arg0: i32, %arg1: i32) -> (i32, i32) {
    %c0_i32 = arith.constant 0 : i32
    %c0_i32_0 = arith.constant 0 : i32
    %c0_i32_1 = arith.constant 0 : i32
    return %c0_i32, %c0_i32_0 : i32, i32
  }
  func.func @transform_1(%arg0: i32, %arg1: i32) -> (i32, i32) {
    %c0_i32 = arith.constant 0 : i32
    return %arg1, %arg0 : i32, i32
  }
  func.func @transform_2(%arg0: i32, %arg1: i32) -> (i32, i32) {
    %c0_i32 = arith.constant 0 : i32
    %c0_i32_0 = arith.constant 0 : i32
    return %c0_i32, %arg0 : i32, i32
  }
  func.func @transform_3(%arg0: i32, %arg1: i32) -> (i32, i32) {
    %c0_i32 = arith.constant 0 : i32
    %c0_i32_0 = arith.constant 0 : i32
    return %c0_i32, %arg0 : i32, i32
  }
}

</mosaic_0001>

<bundles_post_ra>
// kernel: tpu_custom_call.1
= control target key start
LH: loop header
LB: loop body
LE: loop exit
PB: predicated region body
PF: predicated region fallthrough
CT: control target
= control target key end

     0   :  { %8 = vsyncpa [#allocation3], 0  ;;  %s738_s0 = inlined_call_operand.hbm [shape: bf16[16,256], index: 0, kind: input, shape index: {}]   ;;  %s739_s1 = inlined_call_operand.hbm [shape: bf16[256,256], index: 1, kind: input, shape index: {}]   ;;  %s740_s2 = inlined_call_operand.hbm [shape: f32[8,256], index: 2, kind: input, shape index: {}]   ;;  %s741_s3 = inlined_call_operand.hbm [shape: f32[16,256], index: 3, kind: output, shape index: {}]  }
   0x1   :  { %9 = vsyncpa [#allocation6], 0 }
   0x2   :  { %10 = vsyncpa [#allocation4], 0  ;;  %s673_s12 = smov [#allocation5]   ;;  %s674_s14 = smov [#allocation2]  }
   0x3   :  { %s28_s13 = sshll.u32 %s673_s12, 4  ;;  %s16_s15 = sshll.u32 %s674_s14, 4  ;;  %s29_s13 = int_to_ptr.vmem [resolvable:$true] %s28_s13  ;;  %s17_s15 = int_to_ptr.vmem [resolvable:$true] %s16_s15 }
   0x4   :  { %s595_s16 = scalar_lea.vmem %s29_s13, 4096  ;;  %p600_p1 = scmp.lt.s32.totalorder %s29_s13, %s29_s13 }
   0x5   :  { %p596_p0 = scmp.ne.s32.totalorder %s29_s13, %s595_s16  ;;  %p601_p2 = scmp.lt.s32.totalorder %s595_s16, %s595_s16 }
   0x7   :  { %p602_p3 = por %p601_p2, %p600_p1 }
   0x9   :  { %p603_p4 = pnand %p602_p3, %p596_p0 }
   0xb   :  { %606 = shalt.err (!%p603_p4)
}
   0xc   :  { %s675_s17 = smov 128   ;;  %s676_s18 = smov 8  }
   0xd   :  { %34 = dma.hbm_to_vmem [thread:$0]  %s739_s1, 4096, %s29_s13, [#allocation6], %s675_s17, %s675_s17, %s676_s18  }
   0xe   :  { %s615_s21 = scalar_lea.vmem %s17_s15, 256  ;;  %p620_p6 = scmp.lt.s32.totalorder %s17_s15, %s17_s15 }
   0xf   :  { %p616_p5 = scmp.ne.s32.totalorder %s17_s15, %s615_s21  ;;  %p621_p7 = scmp.lt.s32.totalorder %s615_s21, %s615_s21 }
  0x11   :  { %p622_p8 = por %p621_p7, %p620_p6 }
  0x13   :  { %p623_p9 = pnand %p622_p8, %p616_p5 }
  0x15   :  { %626 = shalt.err (!%p623_p9)
}
  0x16   :  { %22 = dma.hbm_to_vmem [thread:$0]  %s738_s0, 256, %s17_s15, [#allocation3], %s675_s17, %s675_s17, %s676_s18  }
  0x17   :  { %s677_s24 = smov [#allocation7]  }
  0x18   :  { %s41_s25 = sshll.u32 %s677_s24, 4  ;;  %s42_s25 = int_to_ptr.vmem [resolvable:$true] %s41_s25 }
  0x19   :  { %s635_s26 = scalar_lea.vmem %s42_s25, 256  ;;  %p640_p11 = scmp.lt.s32.totalorder %s42_s25, %s42_s25 }
  0x1a   :  { %p636_p10 = scmp.ne.s32.totalorder %s42_s25, %s635_s26  ;;  %p641_p12 = scmp.lt.s32.totalorder %s635_s26, %s635_s26 }
  0x1c   :  { %p642_p13 = por %p641_p12, %p640_p11 }
  0x1e   :  { %p643_p0 = pnand %p642_p13, %p636_p10 }
  0x20   :  { %646 = shalt.err (!%p643_p0)
}
  0x21   :  { %44 = dma.hbm_to_vmem [thread:$0]  %s740_s2, 256, %s42_s25, [#allocation6]  }
  0x22   :  { %667 = dma.done.wait [#allocation3], 256  }
  0x23   :  { %668 = vsyncadd [#allocation3], 4294967040 }
  0x24   :  { %669 = dma.done.wait [#allocation6], 4352  }
  0x25   :  { %670 = vsyncadd [#allocation6], 4294962944  ;;  %v532_v0 = vld [vmem:[#allocation5 + $0x74] ss:$8 sps:$4 sm:$0xff]   ;;  %v534_v1 = vld [vmem:[#allocation5 + $0x70] ss:$8 sps:$4 sm:$0xff]  }
  0x26   :  { %275 = vmatprep.subr.bf16.mxu0 %v532_v0  ;;  %v535_v2 = vld [vmem:[#allocation5 + $0x64] ss:$8 sps:$4 sm:$0xff]   ;;  %v537_v3 = vld [vmem:[#allocation5 + $0x60] ss:$8 sps:$4 sm:$0xff]   ;;  %v538_v4 = vld [vmem:[#allocation5 + $0x54] ss:$8 sps:$4 sm:$0xff]  }
  0x27   :  { %276 = vmatpush1.bf16.msra.mxu0 %v534_v1  ;;  %v540_v5 = vld [vmem:[#allocation5 + $0x50] ss:$8 sps:$4 sm:$0xff]   ;;  %v541_v6 = vld [vmem:[#allocation5 + $0x44] ss:$8 sps:$4 sm:$0xff]   ;;  %v543_v7 = vld [vmem:[#allocation5 + $0x40] ss:$8 sps:$4 sm:$0xff]  }
  0x28   :  { %277 = vmatprep.subr.bf16.mxu0 %v535_v2  ;;  %v544_v8 = vld [vmem:[#allocation5 + $0x34] ss:$8 sps:$4 sm:$0xff]   ;;  %v546_v9 = vld [vmem:[#allocation5 + $0x30] ss:$8 sps:$4 sm:$0xff]   ;;  %v547_v10 = vld [vmem:[#allocation5 + $0x24] ss:$8 sps:$4 sm:$0xff]  }
  0x29   :  { %v549_v11 = vld [vmem:[#allocation5 + $0x20] ss:$8 sps:$4 sm:$0xff]   ;;  %v550_v12 = vld [vmem:[#allocation5 + $0x14] ss:$8 sps:$4 sm:$0xff]   ;;  %v552_v14 = vld [vmem:[#allocation5 + $0x10] ss:$8 sps:$4 sm:$0xff]  }
  0x2a   :  { %v582_v13 = vld [vmem:[#allocation2 + $0x4] ss:$8 sps:$4 sm:$0xff]   ;;  %v553_v15 = vld [vmem:[#allocation5 + $0x4] ss:$8 sps:$4 sm:$0xff]   ;;  %v555_v16 = vld [vmem:[#allocation5] ss:$8 sps:$4 sm:$0xff]  }
  0x2b   :  { %278 = vmatpush1.bf16.msra.mxu0 %v537_v3  ;;  %307 = vmatprep.mubr.bf16.mxu0 %v582_v13  ;;  %v556_v17 = vld [vmem:[#allocation5 + $0xf4] ss:$8 sps:$4 sm:$0xff]   ;;  %v558_v18 = vld [vmem:[#allocation5 + $0xf0] ss:$8 sps:$4 sm:$0xff]   ;;  %v559_v19 = vld [vmem:[#allocation5 + $0xe4] ss:$8 sps:$4 sm:$0xff]  }
  0x2c   :  { %279 = vmatprep.subr.bf16.mxu0 %v538_v4  ;;  %v561_v20 = vld [vmem:[#allocation5 + $0xe0] ss:$8 sps:$4 sm:$0xff]   ;;  %v562_v21 = vld [vmem:[#allocation5 + $0xd4] ss:$8 sps:$4 sm:$0xff]   ;;  %v564_v22 = vld [vmem:[#allocation5 + $0xd0] ss:$8 sps:$4 sm:$0xff]  }
  0x2d   :  { %v565_v23 = vld [vmem:[#allocation5 + $0xc4] ss:$8 sps:$4 sm:$0xff]   ;;  %v567_v24 = vld [vmem:[#allocation5 + $0xc0] ss:$8 sps:$4 sm:$0xff]   ;;  %v568_v25 = vld [vmem:[#allocation5 + $0xb4] ss:$8 sps:$4 sm:$0xff]  }
  0x2e   :  { %v570_v26 = vld [vmem:[#allocation5 + $0xb0] ss:$8 sps:$4 sm:$0xff]   ;;  %v571_v27 = vld [vmem:[#allocation5 + $0xa4] ss:$8 sps:$4 sm:$0xff]   ;;  %v573_v28 = vld [vmem:[#allocation5 + $0xa0] ss:$8 sps:$4 sm:$0xff]  }
  0x2f   :  { %280 = vmatpush1.bf16.msra.mxu0 %v540_v5  ;;  %v574_v29 = vld [vmem:[#allocation5 + $0x94] ss:$8 sps:$4 sm:$0xff]   ;;  %v576_v30 = vld [vmem:[#allocation5 + $0x90] ss:$8 sps:$4 sm:$0xff]   ;;  %v577_v31 = vld [vmem:[#allocation5 + $0x84] ss:$8 sps:$4 sm:$0xff]  }
  0x30   :  { %281 = vmatprep.subr.bf16.mxu0 %v541_v6  ;;  %v579_v32 = vld [vmem:[#allocation5 + $0x80] ss:$8 sps:$4 sm:$0xff]   ;;  %v580_v33 = vld [vmem:[#allocation2] ss:$8 sps:$4 sm:$0xff]   ;;  %s679_s0 = smov [#allocation8]  }
  0x31   :  { %s473_s2 = sshll.u32 %s679_s0, 4  ;;  %s474_s2 = int_to_ptr.vmem [resolvable:$true] %s473_s2 }
  0x32   :  { %s647_s28 = scalar_lea.vmem %s474_s2, 512  ;;  %p652_p2 = scmp.lt.s32.totalorder %s474_s2, %s474_s2 }
  0x33   :  { %282 = vmatpush1.bf16.msra.mxu0 %v543_v7  ;;  %p648_p1 = scmp.ne.s32.totalorder %s474_s2, %s647_s28  ;;  %p653_p3 = scmp.lt.s32.totalorder %s647_s28, %s647_s28 }
  0x34   :  { %283 = vmatprep.subr.bf16.mxu0 %v544_v8 }
  0x35   :  { %p654_p4 = por %p653_p3, %p652_p2 }
  0x37   :  { %284 = vmatpush1.bf16.msra.mxu0 %v546_v9  ;;  %p655_p5 = pnand %p654_p4, %p648_p1 }
  0x38   :  { %285 = vmatprep.subr.bf16.mxu0 %v547_v10 }
  0x3b   :  { %286 = vmatpush1.bf16.msra.mxu0 %v549_v11 }
  0x3c   :  { %287 = vmatprep.subr.bf16.mxu0 %v550_v12 }
  0x3f   :  { %288 = vmatpush1.bf16.msra.mxu0 %v552_v14 }
  0x40   :  { %289 = vmatprep.subr.bf16.mxu0 %v553_v15 }
  0x43   :  { %290 = vmatpush1.bf16.msra.mxu0 %v555_v16 }
  0x44   :  { %291 = vmatprep.subr.bf16.mxu0 %v556_v17 }
  0x47   :  { %292 = vmatpush2.bf16.msra.mxu0 %v558_v18  ;;  %v678_v18 = vmov 1966171168  }
  0x48   :  { %293 = vmatprep.subr.bf16.mxu0 %v559_v19  ;;  %v386_v19 = vunpack.c.l.s4 %v678_v18 }
  0x4b   :  { %294 = vmatpush2.bf16.msra.mxu0 %v561_v20  ;;  %v388_v20 = vlaneseq }
  0x4c   :  { %295 = vmatprep.subr.bf16.mxu0 %v562_v21  ;;  %v387_v21 = vunpack.c.0.s8 %v386_v19 }
  0x4f   :  { %296 = vmatpush2.bf16.msra.mxu0 %v564_v22  ;;  %v389_v22 = vshrl.u32 %v388_v20, 7 }
  0x50   :  { %297 = vmatprep.subr.bf16.mxu0 %v565_v23 }
  0x53   :  { %298 = vmatpush2.bf16.msra.mxu0 %v567_v24  ;;  %v390_v24 = vsub.s32 %v387_v21, %v389_v22 }
  0x54   :  { %299 = vmatprep.subr.bf16.mxu0 %v568_v25 }
  0x57   :  { %300 = vmatpush2.bf16.msra.mxu0 %v570_v26 }
  0x58   :  { %301 = vmatprep.subr.bf16.mxu0 %v571_v27 }
  0x5b   :  { %302 = vmatpush2.bf16.msra.mxu0 %v573_v28  ;;  %v375_v28 = vld [vmem:[#allocation7] ss:$8 sm:$0x3] }
  0x5c   :  { %303 = vmatprep.subr.bf16.mxu0 %v574_v29 }
  0x5f   :  { %304 = vmatpush2.bf16.msra.mxu0 %v576_v30  ;;  %v404_v30 = vsub.s32 0, %v389_v22 }
  0x60   :  { %305 = vmatprep.subr.bf16.mxu0 %v577_v31  ;;  %v408_v31 = vsub.s32 1, %v389_v22 }
  0x63   :  { %306 = vmatpush2.bf16.msra.mxu0 %v579_v32 }
  0x66   :  { %308 = vmatmul.mubr.bf16.vlgmr.msra.gmra.mxu0 %v580_v33 }
 0x126   :  { %v711_v34 = vpop.f32.mrf.mxu0 }
 0x127   :  { %v347_v38 = vmul.f32 %v711_v34, %v711_v34 }
 0x128   :  { %v713_v35 = vpop.f32.mrf.mxu0 }
 0x129   :  { %v348_v41 = vmul.f32 %v713_v35, %v713_v35 }
 0x12a   :  { %v715_v36 = vpop.f32.mrf.mxu0 }
 0x12b   :  { %v349_v39 = vmul.f32 %v715_v36, %v715_v36  ;;  %v333_v40 = vadd.f32 %v715_v36, %v711_v34 }
 0x12c   :  { %v717_v37 = vpop.f32.mrf.mxu0 }
 0x12d   :  { %v351_v42 = vadd.f32 %v349_v39, %v347_v38  ;;  %v334_v43 = vrot.slane %v333_v40, 4  ;;  %v340_v44 = vadd.f32 %v717_v37, %v713_v35  ;;  %v350_v45 = vmul.f32 %v717_v37, %v717_v37 }
 0x12f   :  { %v335_v46 = vadd.f32 %v334_v43, %v333_v40  ;;  %v341_v47 = vrot.slane %v340_v44, 4  ;;  %v352_v48 = vrot.slane %v351_v42, 4  ;;  %v358_v49 = vadd.f32 %v350_v45, %v348_v41  ;;  %v377_v43 = vld [vmem:[#allocation7 + $0x1] ss:$8 sm:$0x3] }
 0x131   :  { %v336_v50 = vrot.slane %v335_v46, 2  ;;  %v342_v51 = vadd.f32 %v341_v47, %v340_v44  ;;  %v353_v52 = vadd.f32 %v352_v48, %v351_v42  ;;  %v359_v53 = vrot.slane %v358_v49, 4 }
 0x133   :  { %v337_v54 = vadd.f32 %v336_v50, %v335_v46  ;;  %v343_v55 = vrot.slane %v342_v51, 2  ;;  %v354_v56 = vrot.slane %v353_v52, 2  ;;  %v360_v57 = vadd.f32 %v359_v53, %v358_v49 }
 0x135   :  { %v338_v58 = vrot.slane %v337_v54, 1  ;;  %v344_v59 = vadd.f32 %v343_v55, %v342_v51  ;;  %v355_v60 = vadd.f32 %v354_v56, %v353_v52  ;;  %v361_v61 = vrot.slane %v360_v57, 2 }
 0x137   :  { %v339_v62 = vadd.f32 %v338_v58, %v337_v54  ;;  %v345_v63 = vrot.slane %v344_v59, 1  ;;  %v356_v0 = vrot.slane %v355_v60, 1  ;;  %v362_v1 = vadd.f32 %v361_v61, %v360_v57 }
 0x139   :  { %v346_v2 = vadd.f32 %v345_v63, %v344_v59  ;;  %v357_v3 = vadd.f32 %v356_v0, %v355_v60  ;;  %v363_v4 = vrot.slane %v362_v1, 1  ;;  %v365_v5 = vmul.f32 0.125, %v339_v62 }
 0x13b   :  { %v364_v6 = vadd.f32 %v363_v4, %v362_v1  ;;  %v366_v7 = vmul.f32 0.125, %v346_v2  ;;  %v367_v8 = vmul.f32 0.125, %v357_v3  ;;  %v369_v9 = vmul.f32 %v365_v5, %v365_v5 }
 0x13d   :  { %v368_v10 = vmul.f32 0.125, %v364_v6  ;;  %v370_v11 = vmul.f32 %v366_v7, %v366_v7  ;;  %v371_v12 = vsub.f32 %v367_v8, %v369_v9 }
 0x13f   :  { %v372_v13 = vsub.f32 %v368_v10, %v370_v11  ;;  %v373_v14 = vmax.f32 %v371_v12, 0.0 }
 0x141   :  { %v374_v15 = vmax.f32 %v372_v13, 0.0  ;;  %v378_v16 = vadd.f32 0.8, %v373_v14 }
 0x143   :  { %v379_v17 = vadd.f32 0.8, %v374_v15  ;;  %583 = vrsqrt.f32 %v378_v16 }
 0x145   :  { %585 = vrsqrt.f32 %v379_v17 }
 0x150   :  { %v584_v23 = vpop.eup %583 }
 0x152   :  { %v586_v25 = vpop.eup %585 }
 0x153   :  { %v384_v26 = vcombine.low %v584_v23, %v586_v25 }
 0x155   :  { %v391_v27 = vrot.slane %v384_v26, %v390_v24 }
 0x157   :  { %v398_v29 = vrot.slane %v391_v27, %v390_v24 }
 0x159   :  { %v400_v32 = vmul.f32 %v398_v29, %v375_v28 }
 0x15b   :  { %v405_v33 = vrot.slane %v400_v32, %v404_v30  ;;  %v409_v38 = vrot.slane %v400_v32, %v408_v31 }
 0x15d   :  { %v412_v39 = vmul.f32 %v405_v33, %v365_v5  ;;  %v413_v40 = vmul.f32 %v409_v38, %v366_v7  ;;  %v434_v46 = vmul.f32 %v409_v38, %v713_v35  ;;  %v436_v47 = vmul.f32 %v409_v38, %v717_v37 }
 0x15e   :  { %v433_v50 = vmul.f32 %v405_v33, %v711_v34  ;;  %v435_v51 = vmul.f32 %v405_v33, %v715_v36 }
 0x15f   :  { %v416_v41 = vcombine.low %v412_v39, %v413_v40 }
 0x161   :  { %v423_v42 = vrot.slane %v416_v41, %v390_v24 }
 0x163   :  { %v430_v44 = vrot.slane %v423_v42, %v390_v24 }
 0x165   :  { %v432_v45 = vsub.f32 %v377_v43, %v430_v44 }
 0x167   :  { %v441_v48 = vrot.slane %v432_v45, %v404_v30  ;;  %v445_v49 = vrot.slane %v432_v45, %v408_v31 }
 0x169   :  { %v449_v52 = vadd.f32 %v445_v49, %v434_v46  ;;  %v451_v53 = vadd.f32 %v445_v49, %v436_v47  ;;  %v448_v54 = vadd.f32 %v441_v48, %v433_v50  ;;  %v450_v55 = vadd.f32 %v441_v48, %v435_v51 }
 0x16b   :  { %vm455_vm0 = vcmp.gt.f32.partialorder %v451_v53, 0.0  ;;  %v459_v56 = vmul.f32 0.2, %v451_v53  ;;  %vm452_vm1 = vcmp.gt.f32.partialorder %v448_v54, 0.0  ;;  %vm453_vm2 = vcmp.gt.f32.partialorder %v449_v52, 0.0 }
 0x16c   :  { %vm454_vm3 = vcmp.gt.f32.partialorder %v450_v55, 0.0  ;;  %v456_v35 = vmul.f32 0.2, %v448_v54  ;;  %v457_v57 = vmul.f32 0.2, %v449_v52 }
 0x16d   :  { %v463_v37 = vsel %vm455_vm0, %v451_v53, %v459_v56  ;;  %v458_v58 = vmul.f32 0.2, %v450_v55 }
 0x16e   :  { %467 = vst [vmem:[#allocation8 + $0x18] sm:$0xff] %v463_v37  ;;  %v460_v34 = vsel %vm452_vm1, %v448_v54, %v456_v35  ;;  %v461_v59 = vsel %vm453_vm2, %v449_v52, %v457_v57 }
 0x16f   :  { %v462_v36 = vsel %vm454_vm3, %v450_v55, %v458_v58  ;;  %464 = vst [vmem:[#allocation8] sm:$0xff] %v460_v34  ;;  %465 = vst [vmem:[#allocation8 + $0x8] sm:$0xff] %v461_v59 }
 0x170   :  { %466 = vst [vmem:[#allocation8 + $0x10] sm:$0xff] %v462_v36 }
 0x171   :  { %658 = shalt.err (!%p655_p5)
}
 0x172   :  { %s680_s29 = smov 256   ;;  %s681_s30 = smov 16  }
 0x173   :  { %479 = dma.vmem_to_hbm [thread:$0]  %s474_s2, 512, %s741_s3, [#allocation4], %s680_s29, %s680_s29, %s681_s30  }
 0x174   :  { %671 = dma.done.wait [#allocation4], 512  }
 0x175   :  { %672 = vsyncadd [#allocation4], 4294966784 }
 0x176   :  { %483 = vsyncpa [#allocation3], 1 }
 0x177   :  { %484 = vsyncpa [#allocation6], 1 }
 0x178   :  { %485 = vsyncpa [#allocation4], 1 }

</bundles_post_ra>
